<compile_context>
chip_gen: v7x
topology: tpu7x:2x2x1
jax: 0.10.0
libtpu: 0.0.40
codegen_flags: <defaults>
</compile_context>

<pallas_src>
import functools

import jax
import jax.numpy as jnp
from jax.experimental import pallas as pl
from jax.experimental.pallas import tpu as pltpu


def _mlp_kernel(x_ref, w_ref, b_ref, o_ref):
    """x_ref: (TILE_B, 32) bf16 (features zero-padded 30->32);
    w_ref: (96, 16) bf16 packed weights; b_ref: (8, 16) f32 packed biases;
    o_ref: (TILE_B, 1) f32 output column."""
    h = x_ref[...]                        # (TILE_B, 32) bf16

    # 8-row-aligned, full-lane-width slices of the VMEM-resident slabs.
    w1 = w_ref[0:32, :]                   # (32, 16)  real: (30, 15)
    w2 = w_ref[32:48, :]                  # (16, 16)  real: (15, 15)
    w3 = w_ref[48:64, :]
    w4 = w_ref[64:80, :]
    w5 = w_ref[80:96, :]                  # (16, 16)  real: (15, 1) in col 0

    b1 = b_ref[0:1, :]                    # (1, 16) f32 (padded lanes are 0)
    b2 = b_ref[1:2, :]
    b3 = b_ref[2:3, :]
    b4 = b_ref[3:4, :]
    b5 = b_ref[4:5, :]                    # only lane 0 is the real fc5 bias

    def dense_relu(h_bf16, w, b):
        # bf16 x bf16 -> f32 accumulate on the MXU; bias+ReLU on the VPU.
        y = jnp.dot(h_bf16, w, preferred_element_type=jnp.float32) + b
        return jnp.maximum(y, 0.0)

    h = dense_relu(h, w1, b1).astype(jnp.bfloat16)   # (TILE_B, 16)
    h = dense_relu(h, w2, b2).astype(jnp.bfloat16)
    h = dense_relu(h, w3, b3).astype(jnp.bfloat16)
    h = dense_relu(h, w4, b4).astype(jnp.bfloat16)

    y = dense_relu(h, w5, b5)             # (TILE_B, 16) f32; only col 0 is real
    o_ref[...] = y[:, 0:1]                # masked column store (hidden under MXU)


def pack_params(params):
    """Pack w1..w5 / b1..b5 into zero-padded, 8-row-aligned slabs.
    Weights -> bf16 (MXU operands), biases -> f32 (VPU add)."""
    w = jnp.zeros((96, 16), jnp.float32)
    w = w.at[0:30, 0:15].set(params["w1"])           # rows  0:32 -> fc1
    w = w.at[32:47, 0:15].set(params["w2"])          # rows 32:48 -> fc2
    w = w.at[48:63, 0:15].set(params["w3"])          # rows 48:64 -> fc3
    w = w.at[64:79, 0:15].set(params["w4"])          # rows 64:80 -> fc4
    w = w.at[80:95, 0:1].set(params["w5"])           # rows 80:96 -> fc5 (col 0)

    b = jnp.zeros((8, 16), jnp.float32)
    b = b.at[0, 0:15].set(params["b1"][0])
    b = b.at[1, 0:15].set(params["b2"][0])
    b = b.at[2, 0:15].set(params["b3"][0])
    b = b.at[3, 0:15].set(params["b4"][0])
    b = b.at[4, 0:1].set(params["b5"][0])
    return w.astype(jnp.bfloat16), b


def _round_up(n, m):
    return ((n + m - 1) // m) * m


@functools.partial(jax.jit, static_argnames=("tile_b",))
def mlp_forward(x, params, tile_b=4096):
    """x: (B, 30) f32. params: w1..w5 as (in, out), b1..b5 as (1, out)."""
    B, F = x.shape
    # Clamp the tile so the grid has >=2 tiles for mid-sized B (v7x megacore)
    # while keeping the tile a multiple of 128 rows.
    half_pad = _round_up(-(-B // 2), 128)
    tb = _round_up(max(128, min(tile_b, half_pad)), 128)
    num_tiles = pl.cdiv(B, tb)
    b_pad = num_tiles * tb

    # bf16 input, zero-padded to (b_pad, 32).  Padded rows give relu(bias)
    # garbage that is sliced off below; padded feature columns hit zero weight
    # rows, so the math is exact modulo the bf16 cast.
    x = jnp.pad(x.astype(jnp.bfloat16), ((0, b_pad - B), (0, 32 - F)))

    w_slab, b_slab = pack_params(params)

    out = pl.pallas_call(
        _mlp_kernel,
        out_shape=jax.ShapeDtypeStruct((b_pad, 1), jnp.float32),
        grid=(num_tiles,),
        in_specs=[
            pl.BlockSpec((tb, 32), lambda i: (i, 0)),   # streamed batch tile
            pl.BlockSpec((96, 16), lambda i: (0, 0)),   # weights: VMEM-resident
            pl.BlockSpec((8, 16), lambda i: (0, 0)),    # biases:  VMEM-resident
        ],
        out_specs=pl.BlockSpec((tb, 1), lambda i: (i, 0)),
        compiler_params=pltpu.CompilerParams(
            dimension_semantics=("parallel",),          # megacore split on v7x
        ),
        cost_estimate=pl.CostEstimate(
            flops=2 * 1140 * b_pad,                     # 1140 MACs per row
            transcendentals=0,
            bytes_accessed=68 * b_pad + 96 * 16 * 2 + 8 * 16 * 4,
        ),
    )(x, w_slab, b_slab)

    return out[:B]


def init_params(key):
    """Deterministic init mimicking nn.Linear default (uniform +/- 1/sqrt(fan_in)).
    Weights stored as (in_features, out_features) = transpose of PyTorch layout."""
    dims = [(30, 15), (15, 15), (15, 15), (15, 15), (15, 1)]
    params = {}
    for i, (fan_in, fan_out) in enumerate(dims, start=1):
        key, kw, kb = jax.random.split(key, 3)
        bound = 1.0 / jnp.sqrt(float(fan_in))
        params[f"w{i}"] = jax.random.uniform(
            kw, (fan_in, fan_out), jnp.float32, minval=-bound, maxval=bound)
        params[f"b{i}"] = jax.random.uniform(
            kb, (1, fan_out), jnp.float32, minval=-bound, maxval=bound)
    return params


def reference_forward(x, params):
    h = x
    for i in range(1, 6):
        h = jnp.maximum(h @ params[f"w{i}"] + params[f"b{i}"], 0.0)
    return h


if __name__ == "__main__":
    key = jax.random.PRNGKey(0)
    key, kx = jax.random.split(key)
    params = init_params(key)

    # Small single-tile check (matches the module's expected tiny input).
    B = 8
    x = jax.random.normal(kx, (B, 30), dtype=jnp.float32)
    out = jax.block_until_ready(mlp_forward(x, params))
    ref = reference_forward(x, params)
    assert out.shape == (B, 1), out.shape
    # bf16 MXU operands (f32 accumulation) -> loosened tolerances vs f32 ref.
    assert jnp.allclose(out, ref, atol=5e-2, rtol=5e-2), (out, ref)

    # Multi-tile + batch-padding path (grid > 1, B not a tile multiple).
    key, kx2 = jax.random.split(key)
    B2 = 300
    x2 = jax.random.normal(kx2, (B2, 30), dtype=jnp.float32)
    out2 = jax.block_until_ready(mlp_forward(x2, params))
    ref2 = reference_forward(x2, params)
    assert out2.shape == (B2, 1), out2.shape
    assert jnp.allclose(out2, ref2, atol=5e-2, rtol=5e-2), (out2, ref2)

    print("KERNEL_OK")
</pallas_src>

<mosaic_0001>
module attributes {stable_mosaic.version = 11 : i64} {
  func.func @_mlp_kernel(%arg0: i32, %arg1: memref<128x32xbf16, #tpu.memory_space<vmem>>, %arg2: memref<96x16xbf16, #tpu.memory_space<vmem>>, %arg3: memref<8x16xf32, #tpu.memory_space<vmem>>, %arg4: memref<128x1xf32, #tpu.memory_space<vmem>>) attributes {dimension_semantics = [#tpu.dimension_semantics<parallel>], iteration_bounds = array<i64: 1>, scalar_prefetch = 0 : i64, scratch_operands = 0 : i64, tpu.core_type = #tpu.core_type<tc>, window_params = [{transform_indices = @transform_0, window_bounds = array<i64: 128, 32>}, {pipeline_mode = #tpu.pipeline_mode<synchronous>, transform_indices = @transform_1, window_bounds = array<i64: 96, 16>}, {pipeline_mode = #tpu.pipeline_mode<synchronous>, transform_indices = @transform_2, window_bounds = array<i64: 8, 16>}, {transform_indices = @transform_3, window_bounds = array<i64: 128, 1>}]} {
    %c0 = arith.constant 0 : index
    %c0_0 = arith.constant 0 : index
    %0 = vector.load %arg1[%c0, %c0_0] : memref<128x32xbf16, #tpu.memory_space<vmem>>, vector<128x32xbf16>
    %c0_1 = arith.constant 0 : index
    %c0_2 = arith.constant 0 : index
    %1 = vector.load %arg2[%c0_1, %c0_2] : memref<96x16xbf16, #tpu.memory_space<vmem>>, vector<32x16xbf16>
    %c32 = arith.constant 32 : index
    %c0_3 = arith.constant 0 : index
    %2 = vector.load %arg2[%c32, %c0_3] : memref<96x16xbf16, #tpu.memory_space<vmem>>, vector<16x16xbf16>
    %c48 = arith.constant 48 : index
    %c0_4 = arith.constant 0 : index
    %3 = vector.load %arg2[%c48, %c0_4] : memref<96x16xbf16, #tpu.memory_space<vmem>>, vector<16x16xbf16>
    %c64 = arith.constant 64 : index
    %c0_5 = arith.constant 0 : index
    %4 = vector.load %arg2[%c64, %c0_5] : memref<96x16xbf16, #tpu.memory_space<vmem>>, vector<16x16xbf16>
    %c80 = arith.constant 80 : index
    %c0_6 = arith.constant 0 : index
    %5 = vector.load %arg2[%c80, %c0_6] : memref<96x16xbf16, #tpu.memory_space<vmem>>, vector<16x16xbf16>
    %c0_7 = arith.constant 0 : index
    %c0_8 = arith.constant 0 : index
    %6 = vector.load %arg3[%c0_7, %c0_8] : memref<8x16xf32, #tpu.memory_space<vmem>>, vector<1x16xf32>
    %c1 = arith.constant 1 : index
    %c0_9 = arith.constant 0 : index
    %7 = vector.load %arg3[%c1, %c0_9] : memref<8x16xf32, #tpu.memory_space<vmem>>, vector<1x16xf32>
    %c2 = arith.constant 2 : index
    %c0_10 = arith.constant 0 : index
    %8 = vector.load %arg3[%c2, %c0_10] : memref<8x16xf32, #tpu.memory_space<vmem>>, vector<1x16xf32>
    %c3 = arith.constant 3 : index
    %c0_11 = arith.constant 0 : index
    %9 = vector.load %arg3[%c3, %c0_11] : memref<8x16xf32, #tpu.memory_space<vmem>>, vector<1x16xf32>
    %c4 = arith.constant 4 : index
    %c0_12 = arith.constant 0 : index
    %10 = vector.load %arg3[%c4, %c0_12] : memref<8x16xf32, #tpu.memory_space<vmem>>, vector<1x16xf32>
    %cst = arith.constant dense<0.000000e+00> : vector<128x16xf32>
    %11 = tpu.matmul %0, %1, %cst {dimension_numbers = #tpu.dot_dimension_numbers<[1], [0], [0], [1], [0, 0, 1, 1], [], []>} : vector<128x32xbf16>, vector<32x16xbf16>, vector<128x16xf32> -> vector<128x16xf32>
    %12 = vector.broadcast %6 : vector<1x16xf32> to vector<128x16xf32>
    %13 = arith.addf %11, %12 : vector<128x16xf32>
    %cst_13 = arith.constant 0.000000e+00 : f32
    %14 = vector.broadcast %cst_13 : f32 to vector<128x16xf32>
    %15 = arith.maximumf %13, %14 : vector<128x16xf32>
    %16 = arith.truncf %15 : vector<128x16xf32> to vector<128x16xbf16>
    %cst_14 = arith.constant dense<0.000000e+00> : vector<128x16xf32>
    %17 = tpu.matmul %16, %2, %cst_14 {dimension_numbers = #tpu.dot_dimension_numbers<[1], [0], [0], [1], [0, 0, 1, 1], [], []>} : vector<128x16xbf16>, vector<16x16xbf16>, vector<128x16xf32> -> vector<128x16xf32>
    %18 = vector.broadcast %7 : vector<1x16xf32> to vector<128x16xf32>
    %19 = arith.addf %17, %18 : vector<128x16xf32>
    %cst_15 = arith.constant 0.000000e+00 : f32
    %20 = vector.broadcast %cst_15 : f32 to vector<128x16xf32>
    %21 = arith.maximumf %19, %20 : vector<128x16xf32>
    %22 = arith.truncf %21 : vector<128x16xf32> to vector<128x16xbf16>
    %cst_16 = arith.constant dense<0.000000e+00> : vector<128x16xf32>
    %23 = tpu.matmul %22, %3, %cst_16 {dimension_numbers = #tpu.dot_dimension_numbers<[1], [0], [0], [1], [0, 0, 1, 1], [], []>} : vector<128x16xbf16>, vector<16x16xbf16>, vector<128x16xf32> -> vector<128x16xf32>
    %24 = vector.broadcast %8 : vector<1x16xf32> to vector<128x16xf32>
    %25 = arith.addf %23, %24 : vector<128x16xf32>
    %cst_17 = arith.constant 0.000000e+00 : f32
    %26 = vector.broadcast %cst_17 : f32 to vector<128x16xf32>
    %27 = arith.maximumf %25, %26 : vector<128x16xf32>
    %28 = arith.truncf %27 : vector<128x16xf32> to vector<128x16xbf16>
    %cst_18 = arith.constant dense<0.000000e+00> : vector<128x16xf32>
    %29 = tpu.matmul %28, %4, %cst_18 {dimension_numbers = #tpu.dot_dimension_numbers<[1], [0], [0], [1], [0, 0, 1, 1], [], []>} : vector<128x16xbf16>, vector<16x16xbf16>, vector<128x16xf32> -> vector<128x16xf32>
    %30 = vector.broadcast %9 : vector<1x16xf32> to vector<128x16xf32>
    %31 = arith.addf %29, %30 : vector<128x16xf32>
    %cst_19 = arith.constant 0.000000e+00 : f32
    %32 = vector.broadcast %cst_19 : f32 to vector<128x16xf32>
    %33 = arith.maximumf %31, %32 : vector<128x16xf32>
    %34 = arith.truncf %33 : vector<128x16xf32> to vector<128x16xbf16>
    %cst_20 = arith.constant dense<0.000000e+00> : vector<128x16xf32>
    %35 = tpu.matmul %34, %5, %cst_20 {dimension_numbers = #tpu.dot_dimension_numbers<[1], [0], [0], [1], [0, 0, 1, 1], [], []>} : vector<128x16xbf16>, vector<16x16xbf16>, vector<128x16xf32> -> vector<128x16xf32>
    %36 = vector.broadcast %10 : vector<1x16xf32> to vector<128x16xf32>
    %37 = arith.addf %35, %36 : vector<128x16xf32>
    %cst_21 = arith.constant 0.000000e+00 : f32
    %38 = vector.broadcast %cst_21 : f32 to vector<128x16xf32>
    %39 = arith.maximumf %37, %38 : vector<128x16xf32>
    %40 = vector.extract_strided_slice %39 {offsets = [0, 0], sizes = [128, 1], strides = [1, 1]} : vector<128x16xf32> to vector<128x1xf32>
    %c0_22 = arith.constant 0 : index
    %c0_23 = arith.constant 0 : index
    %41 = vector.load %arg4[%c0_22, %c0_23] : memref<128x1xf32, #tpu.memory_space<vmem>>, vector<128x1xf32>
    tpu.vector_store %arg4[%c0_22, %c0_23], %40 {strides = array<i32>} : memref<128x1xf32, #tpu.memory_space<vmem>>, vector<128x1xf32>,
    return
  }
  func.func @transform_0(%arg0: i32) -> (i32, i32) {
    %c0_i32 = arith.constant 0 : i32
    %c0_i32_0 = arith.constant 0 : i32
    return %arg0, %c0_i32 : i32, i32
  }
  func.func @transform_1(%arg0: i32) -> (i32, i32) {
    %c0_i32 = arith.constant 0 : i32
    %c0_i32_0 = arith.constant 0 : i32
    %c0_i32_1 = arith.constant 0 : i32
    return %c0_i32, %c0_i32_0 : i32, i32
  }
  func.func @transform_2(%arg0: i32) -> (i32, i32) {
    %c0_i32 = arith.constant 0 : i32
    %c0_i32_0 = arith.constant 0 : i32
    %c0_i32_1 = arith.constant 0 : i32
    return %c0_i32, %c0_i32_0 : i32, i32
  }
  func.func @transform_3(%arg0: i32) -> (i32, i32) {
    %c0_i32 = arith.constant 0 : i32
    %c0_i32_0 = arith.constant 0 : i32
    return %arg0, %c0_i32 : i32, i32
  }
}

</mosaic_0001>

<bundles_post_ra>
// kernel: mlp_forward.1
= control target key start
LH: loop header
LB: loop body
LE: loop exit
PB: predicated region body
PF: predicated region fallthrough
CT: control target
= control target key end

     0   :  { %vm104_vm0 = vcmask 261120   ;;  %vm260_vm1 = vcmask 130048   ;;  %vm863_vm2 = vcmask 7168   ;;  %s1278_s1 = inlined_call_operand.vmem [shape: bf16[96,16], index: 1, kind: input, shape index: {}]   ;;  %s1279_s0 = inlined_call_operand.vmem [shape: bf16[128,32], index: 0, kind: input, shape index: {}]   ;;  %s1280_s2 = inlined_call_operand.vmem [shape: f32[8,16], index: 2, kind: input, shape index: {}]   ;;  %s1281_s3 = inlined_call_operand.vmem [shape: f32[128,1], index: 3, kind: output, shape index: {}]  }
   0x1   :  { %v1083_v0 = vld [vmem:[%s1278_s1] sm:$0xff]   ;;  %v1084_v1 = vld [vmem:[%s1278_s1 + $0x8] sm:$0xff]   ;;  %v1087_v4 = vld [vmem:[%s1279_s0 + $0x10] sm:$0xff]  }
   0x2   :  { %989 = vmatprep.subr.bf16.mxu0 %v1083_v0  ;;  %v1085_v2 = vld [vmem:[%s1279_s0] sm:$0xff]   ;;  %v1086_v3 = vld [vmem:[%s1279_s0 + $0x8] sm:$0xff]   ;;  %v1093_v5 = vld [vmem:[%s1278_s1 + $0x10] sm:$0xff]  }
   0x3   :  { %990 = vmatpush3.bf16.msra.mxu0 %v1083_v0  ;;  %993 = vmatprep.mubr.msk.bf16.mxu0 %vm104_vm0, %v1085_v2  ;;  %v1088_v6 = vld [vmem:[%s1279_s0 + $0x18] sm:$0xff]   ;;  %v1089_v7 = vld [vmem:[%s1279_s0 + $0x20] sm:$0xff]   ;;  %v1090_v8 = vld [vmem:[%s1279_s0 + $0x28] sm:$0xff]  }
   0x4   :  { %991 = vmatprep.subr.bf16.mxu0 %v1084_v1  ;;  %1081 = vmatprep.subr.bf16.mxu1 %v1093_v5  ;;  %v1091_v9 = vld [vmem:[%s1279_s0 + $0x30] sm:$0xff]   ;;  %v1092_v10 = vld [vmem:[%s1279_s0 + $0x38] sm:$0xff]   ;;  %v884_v12 = vld [vmem:[%s1280_s2] ss:$0 sm:$0xff] }
   0x5   :  { %1082 = vmatpush3.bf16.msra.mxu1 %v1093_v5  ;;  %v1094_v11 = vld [vmem:[%s1278_s1 + $0x18] sm:$0xff]  }
   0x6   :  { %1027 = vmatprep.subr.bf16.mxu1 %v1094_v11 }
   0x7   :  { %992 = vmatpush3.bf16.msra.mxu0 %v1084_v1 }
   0x8   :  { %1009 = vmatprep.subr.bf16.mxu0 %v1093_v5 }
   0xa   :  { %994 = vmatmul.mubr.msk.bf16.vlgmr.msra.gmra.mrb[0].mxu0 %vm104_vm0, %v1086_v3 }
   0xb   :  { %997 = vmatprep.mubr.msk.bf16.mxu0 %vm104_vm0, %v1087_v4  ;;  %1010 = vmatpush3.bf16.msra.mxu0 %v1093_v5  ;;  %v903_v5 = vld [vmem:[%s1280_s2 + $0x1] ss:$0 sm:$0xff] }
  0x12   :  { %998 = vmatmul.mubr.msk.bf16.gmra.mrb[4].mxu0 %vm104_vm0, %v1088_v6 }
  0x13   :  { %1001 = vmatprep.mubr.msk.bf16.mxu0 %vm104_vm0, %v1089_v7 }
  0x1a   :  { %1002 = vmatmul.mubr.msk.bf16.gmra.mrb[8].mxu0 %vm104_vm0, %v1090_v8 }
  0x1b   :  { %1005 = vmatprep.mubr.msk.bf16.mxu0 %vm104_vm0, %v1091_v9 }
  0x22   :  { %1006 = vmatmul.mubr.msk.bf16.gmra.mrb[12].mxu0 %vm104_vm0, %v1092_v10 }
  0xdd   :  { %v995_v13 = vpop.f32.mrb[0].mxu0 }
  0xde   :  { %v172_v14 = vadd.f32 %v995_v13, %v884_v12  ;;  %v163_v15 = vpop.f32.mrb[1].mxu0 }
  0xdf   :  { %v164_v16 = vadd.f32 %v884_v12, %v163_v15  ;;  %v996_v17 = vpop.f32.mrb[2].mxu0 }
  0xe0   :  { %v175_v18 = vadd.f32 %v996_v17, %v884_v12  ;;  %v166_v19 = vpop.f32.mrb[3].mxu0  ;;  %v228_v21 = vmax.f32 %v172_v14, 0.0 }
  0xe1   :  { %v167_v20 = vadd.f32 %v884_v12, %v166_v19  ;;  %v226_v23 = vmax.f32 %v164_v16, 0.0 }
  0xe2   :  { %v229_v22 = vmax.f32 %v175_v18, 0.0 }
  0xe3   :  { %v227_v24 = vmax.f32 %v167_v20, 0.0 }
  0xe4   :  { %v243_v25 = vpack.c.bf16 %v229_v22, %v228_v21 }
  0xe5   :  { %v242_v26 = vpack.c.bf16 %v227_v24, %v226_v23  ;;  %v999_v27 = vpop.f32.mrb[4].mxu0 }
  0xe6   :  { %v188_v28 = vadd.f32 %v999_v27, %v884_v12  ;;  %v179_v29 = vpop.f32.mrb[5].mxu0 }
  0xe7   :  { %v180_v30 = vadd.f32 %v884_v12, %v179_v29  ;;  %v1000_v31 = vpop.f32.mrb[6].mxu0  ;;  %1011 = vmatprep.mubr.msk.bf16.mxu0 %vm260_vm1, %v242_v26 }
  0xe8   :  { %v191_v32 = vadd.f32 %v1000_v31, %v884_v12  ;;  %v182_v33 = vpop.f32.mrb[7].mxu0  ;;  %1012 = vmatmul.mubr.msk.bf16.vlgmr.msra.gmra.mrb[16].mxu0 %vm260_vm1, %v243_v25  ;;  %v232_v35 = vmax.f32 %v188_v28, 0.0 }
  0xe9   :  { %v183_v34 = vadd.f32 %v884_v12, %v182_v33  ;;  %v230_v37 = vmax.f32 %v180_v30, 0.0 }
  0xea   :  { %v233_v36 = vmax.f32 %v191_v32, 0.0 }
  0xeb   :  { %v231_v38 = vmax.f32 %v183_v34, 0.0 }
  0xec   :  { %v245_v39 = vpack.c.bf16 %v233_v36, %v232_v35 }
  0xed   :  { %v1003_v40 = vpop.f32.mrb[8].mxu0  ;;  %v244_v41 = vpack.c.bf16 %v231_v38, %v230_v37 }
  0xee   :  { %v204_v42 = vadd.f32 %v1003_v40, %v884_v12  ;;  %v195_v43 = vpop.f32.mrb[9].mxu0 }
  0xef   :  { %v196_v44 = vadd.f32 %v884_v12, %v195_v43  ;;  %v1004_v45 = vpop.f32.mrb[10].mxu0  ;;  %1015 = vmatprep.mubr.msk.bf16.mxu1 %vm260_vm1, %v244_v41 }
  0xf0   :  { %v207_v46 = vadd.f32 %v1004_v45, %v884_v12  ;;  %v198_v47 = vpop.f32.mrb[11].mxu0  ;;  %1016 = vmatmul.mubr.msk.bf16.vlgmr.msra.gmra.mrb[0].mxu1 %vm260_vm1, %v245_v39  ;;  %v236_v49 = vmax.f32 %v204_v42, 0.0 }
  0xf1   :  { %v199_v48 = vadd.f32 %v884_v12, %v198_v47  ;;  %1028 = vmatpush3.bf16.msra.mxu1 %v1094_v11  ;;  %v234_v51 = vmax.f32 %v196_v44, 0.0 }
  0xf2   :  { %v237_v50 = vmax.f32 %v207_v46, 0.0 }
  0xf3   :  { %v235_v52 = vmax.f32 %v199_v48, 0.0 }
  0xf4   :  { %v247_v53 = vpack.c.bf16 %v237_v50, %v236_v49 }
  0xf5   :  { %v246_v54 = vpack.c.bf16 %v235_v52, %v234_v51  ;;  %v1007_v55 = vpop.f32.mrb[12].mxu0 }
  0xf6   :  { %v220_v56 = vadd.f32 %v1007_v55, %v884_v12  ;;  %v211_v57 = vpop.f32.mrb[13].mxu0 }
  0xf7   :  { %v212_v58 = vadd.f32 %v884_v12, %v211_v57  ;;  %v1008_v59 = vpop.f32.mrb[14].mxu0  ;;  %1019 = vmatprep.mubr.msk.bf16.mxu1 %vm260_vm1, %v246_v54 }
  0xf8   :  { %v223_v60 = vadd.f32 %v1008_v59, %v884_v12  ;;  %v214_v61 = vpop.f32.mrb[15].mxu0  ;;  %1020 = vmatmul.mubr.msk.bf16.gmra.mrb[4].mxu1 %vm260_vm1, %v247_v53  ;;  %v240_v63 = vmax.f32 %v220_v56, 0.0 }
  0xf9   :  { %v215_v62 = vadd.f32 %v884_v12, %v214_v61  ;;  %v238_v1 = vmax.f32 %v212_v58, 0.0 }
  0xfa   :  { %v241_v0 = vmax.f32 %v223_v60, 0.0 }
  0xfb   :  { %v239_v2 = vmax.f32 %v215_v62, 0.0  ;;  %v1095_v62 = vld [vmem:[%s1278_s1 + $0x20] sm:$0xff]  }
  0xfc   :  { %v249_v3 = vpack.c.bf16 %v241_v0, %v240_v63  ;;  %1045 = vmatprep.subr.bf16.mxu0 %v1095_v62  ;;  %v1096_v63 = vld [vmem:[%s1278_s1 + $0x28] sm:$0xff]   ;;  %v913_v0 = vld [vmem:[%s1280_s2 + $0x2] ss:$0 sm:$0xff] }
  0xfd   :  { %v248_v4 = vpack.c.bf16 %v239_v2, %v238_v1  ;;  %1046 = vmatpush3.bf16.msra.mxu0 %v1095_v62  ;;  %1063 = vmatprep.subr.bf16.mxu1 %v1096_v63 }
  0xff   :  { %1023 = vmatprep.mubr.msk.bf16.mxu1 %vm260_vm1, %v248_v4 }
 0x100   :  { %1024 = vmatmul.mubr.msk.bf16.gmra.mrb[8].mxu1 %vm260_vm1, %v249_v3 }
 0x1bb   :  { %v1013_v6 = vpop.f32.mrb[16].mxu0 }
 0x1bc   :  { %v328_v7 = vadd.f32 %v1013_v6, %v903_v5  ;;  %v319_v8 = vpop.f32.mrb[17].mxu0 }
 0x1bd   :  { %v320_v9 = vadd.f32 %v903_v5, %v319_v8  ;;  %v1014_v10 = vpop.f32.mrb[18].mxu0 }
 0x1be   :  { %v331_v11 = vadd.f32 %v1014_v10, %v903_v5  ;;  %v322_v12 = vpop.f32.mrb[19].mxu0  ;;  %v384_v14 = vmax.f32 %v328_v7, 0.0 }
 0x1bf   :  { %v323_v13 = vadd.f32 %v903_v5, %v322_v12  ;;  %v382_v16 = vmax.f32 %v320_v9, 0.0 }
 0x1c0   :  { %v385_v15 = vmax.f32 %v331_v11, 0.0 }
 0x1c1   :  { %v383_v17 = vmax.f32 %v323_v13, 0.0 }
 0x1c2   :  { %v399_v18 = vpack.c.bf16 %v385_v15, %v384_v14 }
 0x1c3   :  { %v398_v19 = vpack.c.bf16 %v383_v17, %v382_v16  ;;  %v1017_v20 = vpop.f32.mrb[0].mxu1 }
 0x1c4   :  { %v344_v21 = vadd.f32 %v1017_v20, %v903_v5  ;;  %v335_v22 = vpop.f32.mrb[1].mxu1 }
 0x1c5   :  { %v336_v23 = vadd.f32 %v903_v5, %v335_v22  ;;  %v1018_v24 = vpop.f32.mrb[2].mxu1  ;;  %1029 = vmatprep.mubr.msk.bf16.mxu1 %vm260_vm1, %v398_v19 }
 0x1c6   :  { %v347_v25 = vadd.f32 %v1018_v24, %v903_v5  ;;  %v338_v26 = vpop.f32.mrb[3].mxu1  ;;  %1030 = vmatmul.mubr.msk.bf16.vlgmr.msra.gmra.mrb[12].mxu1 %vm260_vm1, %v399_v18  ;;  %v388_v28 = vmax.f32 %v344_v21, 0.0 }
 0x1c7   :  { %v339_v27 = vadd.f32 %v903_v5, %v338_v26  ;;  %v386_v30 = vmax.f32 %v336_v23, 0.0  ;;  %1064 = vmatpush3.bf16.msra.mxu1 %v1096_v63 }
 0x1c8   :  { %v389_v29 = vmax.f32 %v347_v25, 0.0 }
 0x1c9   :  { %v387_v31 = vmax.f32 %v339_v27, 0.0 }
 0x1ca   :  { %v401_v32 = vpack.c.bf16 %v389_v29, %v388_v28 }
 0x1cb   :  { %v400_v33 = vpack.c.bf16 %v387_v31, %v386_v30  ;;  %v1021_v34 = vpop.f32.mrb[4].mxu1 }
 0x1cc   :  { %v360_v35 = vadd.f32 %v1021_v34, %v903_v5  ;;  %v351_v36 = vpop.f32.mrb[5].mxu1 }
 0x1cd   :  { %v352_v37 = vadd.f32 %v903_v5, %v351_v36  ;;  %v1022_v38 = vpop.f32.mrb[6].mxu1  ;;  %1033 = vmatprep.mubr.msk.bf16.mxu1 %vm260_vm1, %v400_v33 }
 0x1ce   :  { %v363_v39 = vadd.f32 %v1022_v38, %v903_v5  ;;  %v354_v40 = vpop.f32.mrb[7].mxu1  ;;  %1034 = vmatmul.mubr.msk.bf16.gmra.mrb[16].mxu1 %vm260_vm1, %v401_v32  ;;  %v392_v42 = vmax.f32 %v360_v35, 0.0 }
 0x1cf   :  { %v355_v41 = vadd.f32 %v903_v5, %v354_v40  ;;  %v390_v44 = vmax.f32 %v352_v37, 0.0 }
 0x1d0   :  { %v393_v43 = vmax.f32 %v363_v39, 0.0 }
 0x1d1   :  { %v391_v45 = vmax.f32 %v355_v41, 0.0 }
 0x1d2   :  { %v403_v46 = vpack.c.bf16 %v393_v43, %v392_v42 }
 0x1d3   :  { %v402_v47 = vpack.c.bf16 %v391_v45, %v390_v44  ;;  %v1025_v48 = vpop.f32.mrb[8].mxu1 }
 0x1d4   :  { %v376_v49 = vadd.f32 %v1025_v48, %v903_v5  ;;  %v367_v50 = vpop.f32.mrb[9].mxu1 }
 0x1d5   :  { %v368_v51 = vadd.f32 %v903_v5, %v367_v50  ;;  %v1026_v52 = vpop.f32.mrb[10].mxu1  ;;  %1037 = vmatprep.mubr.msk.bf16.mxu1 %vm260_vm1, %v402_v47 }
 0x1d6   :  { %v379_v53 = vadd.f32 %v1026_v52, %v903_v5  ;;  %v370_v54 = vpop.f32.mrb[11].mxu1  ;;  %1038 = vmatmul.mubr.msk.bf16.gmra.mrb[20].mxu1 %vm260_vm1, %v403_v46  ;;  %v396_v56 = vmax.f32 %v376_v49, 0.0 }
 0x1d7   :  { %v371_v55 = vadd.f32 %v903_v5, %v370_v54  ;;  %v394_v58 = vmax.f32 %v368_v51, 0.0 }
 0x1d8   :  { %v397_v57 = vmax.f32 %v379_v53, 0.0 }
 0x1d9   :  { %v395_v59 = vmax.f32 %v371_v55, 0.0 }
 0x1da   :  { %v405_v60 = vpack.c.bf16 %v397_v57, %v396_v56  ;;  %v923_v57 = vld [vmem:[%s1280_s2 + $0x3] ss:$0 sm:$0xff] }
 0x1db   :  { %v404_v61 = vpack.c.bf16 %v395_v59, %v394_v58 }
 0x1dd   :  { %1041 = vmatprep.mubr.msk.bf16.mxu1 %vm260_vm1, %v404_v61 }
 0x1de   :  { %1042 = vmatmul.mubr.msk.bf16.gmra.mrb[24].mxu1 %vm260_vm1, %v405_v60 }
 0x299   :  { %v1031_v1 = vpop.f32.mrb[12].mxu1 }
 0x29a   :  { %v483_v2 = vadd.f32 %v1031_v1, %v913_v0  ;;  %v474_v3 = vpop.f32.mrb[13].mxu1 }
 0x29b   :  { %v475_v4 = vadd.f32 %v913_v0, %v474_v3  ;;  %v1032_v5 = vpop.f32.mrb[14].mxu1 }
 0x29c   :  { %v486_v6 = vadd.f32 %v1032_v5, %v913_v0  ;;  %v477_v7 = vpop.f32.mrb[15].mxu1  ;;  %v539_v9 = vmax.f32 %v483_v2, 0.0 }
 0x29d   :  { %v478_v8 = vadd.f32 %v913_v0, %v477_v7  ;;  %v537_v11 = vmax.f32 %v475_v4, 0.0 }
 0x29e   :  { %v540_v10 = vmax.f32 %v486_v6, 0.0 }
 0x29f   :  { %v538_v12 = vmax.f32 %v478_v8, 0.0 }
 0x2a0   :  { %v554_v13 = vpack.c.bf16 %v540_v10, %v539_v9 }
 0x2a1   :  { %v553_v14 = vpack.c.bf16 %v538_v12, %v537_v11  ;;  %v1035_v15 = vpop.f32.mrb[16].mxu1 }
 0x2a2   :  { %v499_v16 = vadd.f32 %v1035_v15, %v913_v0  ;;  %v490_v17 = vpop.f32.mrb[17].mxu1 }
 0x2a3   :  { %v491_v18 = vadd.f32 %v913_v0, %v490_v17  ;;  %v1036_v19 = vpop.f32.mrb[18].mxu1  ;;  %1047 = vmatprep.mubr.msk.bf16.mxu0 %vm260_vm1, %v553_v14 }
 0x2a4   :  { %v502_v20 = vadd.f32 %v1036_v19, %v913_v0  ;;  %v493_v21 = vpop.f32.mrb[19].mxu1  ;;  %1048 = vmatmul.mubr.msk.bf16.vlgmr.msra.gmra.mrb[20].mxu0 %vm260_vm1, %v554_v13  ;;  %v543_v23 = vmax.f32 %v499_v16, 0.0 }
 0x2a5   :  { %v494_v22 = vadd.f32 %v913_v0, %v493_v21  ;;  %v541_v25 = vmax.f32 %v491_v18, 0.0 }
 0x2a6   :  { %v544_v24 = vmax.f32 %v502_v20, 0.0 }
 0x2a7   :  { %v542_v26 = vmax.f32 %v494_v22, 0.0 }
 0x2a8   :  { %v556_v27 = vpack.c.bf16 %v544_v24, %v543_v23 }
 0x2a9   :  { %v555_v28 = vpack.c.bf16 %v542_v26, %v541_v25  ;;  %v1039_v29 = vpop.f32.mrb[20].mxu1 }
 0x2aa   :  { %v515_v30 = vadd.f32 %v1039_v29, %v913_v0  ;;  %v506_v31 = vpop.f32.mrb[21].mxu1 }
 0x2ab   :  { %v507_v32 = vadd.f32 %v913_v0, %v506_v31  ;;  %v1040_v33 = vpop.f32.mrb[22].mxu1  ;;  %1051 = vmatprep.mubr.msk.bf16.mxu0 %vm260_vm1, %v555_v28 }
 0x2ac   :  { %v518_v34 = vadd.f32 %v1040_v33, %v913_v0  ;;  %v509_v35 = vpop.f32.mrb[23].mxu1  ;;  %1052 = vmatmul.mubr.msk.bf16.gmra.mrb[24].mxu0 %vm260_vm1, %v556_v27  ;;  %v547_v37 = vmax.f32 %v515_v30, 0.0 }
 0x2ad   :  { %v510_v36 = vadd.f32 %v913_v0, %v509_v35  ;;  %v545_v39 = vmax.f32 %v507_v32, 0.0 }
 0x2ae   :  { %v548_v38 = vmax.f32 %v518_v34, 0.0 }
 0x2af   :  { %v546_v40 = vmax.f32 %v510_v36, 0.0 }
 0x2b0   :  { %v558_v41 = vpack.c.bf16 %v548_v38, %v547_v37 }
 0x2b1   :  { %v557_v42 = vpack.c.bf16 %v546_v40, %v545_v39  ;;  %v1043_v43 = vpop.f32.mrb[24].mxu1 }
 0x2b2   :  { %v531_v44 = vadd.f32 %v1043_v43, %v913_v0  ;;  %v522_v45 = vpop.f32.mrb[25].mxu1 }
 0x2b3   :  { %v523_v46 = vadd.f32 %v913_v0, %v522_v45  ;;  %v1044_v47 = vpop.f32.mrb[26].mxu1  ;;  %1055 = vmatprep.mubr.msk.bf16.mxu0 %vm260_vm1, %v557_v42 }
 0x2b4   :  { %v534_v48 = vadd.f32 %v1044_v47, %v913_v0  ;;  %v525_v49 = vpop.f32.mrb[27].mxu1  ;;  %1056 = vmatmul.mubr.msk.bf16.gmra.mrb[28].mxu0 %vm260_vm1, %v558_v41  ;;  %v551_v51 = vmax.f32 %v531_v44, 0.0 }
 0x2b5   :  { %v526_v50 = vadd.f32 %v913_v0, %v525_v49  ;;  %v549_v53 = vmax.f32 %v523_v46, 0.0 }
 0x2b6   :  { %v552_v52 = vmax.f32 %v534_v48, 0.0 }
 0x2b7   :  { %v550_v54 = vmax.f32 %v526_v50, 0.0  ;;  %v933_v50 = vld [vmem:[%s1280_s2 + $0x4] ss:$0 sm:$0xff] }
 0x2b8   :  { %v560_v55 = vpack.c.bf16 %v552_v52, %v551_v51 }
 0x2b9   :  { %v559_v56 = vpack.c.bf16 %v550_v54, %v549_v53 }
 0x2bb   :  { %1059 = vmatprep.mubr.msk.bf16.mxu0 %vm260_vm1, %v559_v56 }
 0x2bc   :  { %1060 = vmatmul.mubr.msk.bf16.gmra.mrb[32].mxu0 %vm260_vm1, %v560_v55 }
 0x377   :  { %v1049_v58 = vpop.f32.mrb[20].mxu0 }
 0x378   :  { %v638_v59 = vadd.f32 %v1049_v58, %v923_v57  ;;  %v629_v60 = vpop.f32.mrb[21].mxu0 }
 0x379   :  { %v630_v61 = vadd.f32 %v923_v57, %v629_v60  ;;  %v1050_v62 = vpop.f32.mrb[22].mxu0 }
 0x37a   :  { %v641_v63 = vadd.f32 %v1050_v62, %v923_v57  ;;  %v632_v0 = vpop.f32.mrb[23].mxu0  ;;  %v694_v2 = vmax.f32 %v638_v59, 0.0 }
 0x37b   :  { %v633_v1 = vadd.f32 %v923_v57, %v632_v0  ;;  %v692_v4 = vmax.f32 %v630_v61, 0.0 }
 0x37c   :  { %v695_v3 = vmax.f32 %v641_v63, 0.0 }
 0x37d   :  { %v693_v5 = vmax.f32 %v633_v1, 0.0 }
 0x37e   :  { %v709_v6 = vpack.c.bf16 %v695_v3, %v694_v2 }
 0x37f   :  { %v708_v7 = vpack.c.bf16 %v693_v5, %v692_v4  ;;  %v1053_v8 = vpop.f32.mrb[24].mxu0 }
 0x380   :  { %v654_v9 = vadd.f32 %v1053_v8, %v923_v57  ;;  %v645_v10 = vpop.f32.mrb[25].mxu0 }
 0x381   :  { %v646_v11 = vadd.f32 %v923_v57, %v645_v10  ;;  %v1054_v12 = vpop.f32.mrb[26].mxu0  ;;  %1065 = vmatprep.mubr.msk.bf16.mxu1 %vm260_vm1, %v708_v7 }
 0x382   :  { %v657_v13 = vadd.f32 %v1054_v12, %v923_v57  ;;  %v648_v14 = vpop.f32.mrb[27].mxu0  ;;  %1066 = vmatmul.mubr.msk.bf16.vlgmr.msra.gmra.mrb[28].mxu1 %vm260_vm1, %v709_v6  ;;  %v698_v16 = vmax.f32 %v654_v9, 0.0 }
 0x383   :  { %v649_v15 = vadd.f32 %v923_v57, %v648_v14  ;;  %v696_v18 = vmax.f32 %v646_v11, 0.0 }
 0x384   :  { %v699_v17 = vmax.f32 %v657_v13, 0.0 }
 0x385   :  { %v697_v19 = vmax.f32 %v649_v15, 0.0 }
 0x386   :  { %v711_v20 = vpack.c.bf16 %v699_v17, %v698_v16 }
 0x387   :  { %v710_v21 = vpack.c.bf16 %v697_v19, %v696_v18  ;;  %v1057_v22 = vpop.f32.mrb[28].mxu0 }
 0x388   :  { %v670_v23 = vadd.f32 %v1057_v22, %v923_v57  ;;  %v661_v24 = vpop.f32.mrb[29].mxu0 }
 0x389   :  { %v662_v25 = vadd.f32 %v923_v57, %v661_v24  ;;  %v1058_v26 = vpop.f32.mrb[30].mxu0  ;;  %1069 = vmatprep.mubr.msk.bf16.mxu1 %vm260_vm1, %v710_v21 }
 0x38a   :  { %v673_v27 = vadd.f32 %v1058_v26, %v923_v57  ;;  %v664_v28 = vpop.f32.mrb[31].mxu0  ;;  %1070 = vmatmul.mubr.msk.bf16.gmra.mrb[32].mxu1 %vm260_vm1, %v711_v20  ;;  %v702_v30 = vmax.f32 %v670_v23, 0.0 }
 0x38b   :  { %v665_v29 = vadd.f32 %v923_v57, %v664_v28  ;;  %v700_v32 = vmax.f32 %v662_v25, 0.0 }
 0x38c   :  { %v703_v31 = vmax.f32 %v673_v27, 0.0 }
 0x38d   :  { %v701_v33 = vmax.f32 %v665_v29, 0.0 }
 0x38e   :  { %v713_v34 = vpack.c.bf16 %v703_v31, %v702_v30 }
 0x38f   :  { %v712_v35 = vpack.c.bf16 %v701_v33, %v700_v32  ;;  %v1061_v36 = vpop.f32.mrb[32].mxu0 }
 0x390   :  { %v686_v37 = vadd.f32 %v1061_v36, %v923_v57  ;;  %v677_v38 = vpop.f32.mrb[33].mxu0 }
 0x391   :  { %v678_v39 = vadd.f32 %v923_v57, %v677_v38  ;;  %v1062_v40 = vpop.f32.mrb[34].mxu0  ;;  %1073 = vmatprep.mubr.msk.bf16.mxu1 %vm260_vm1, %v712_v35 }
 0x392   :  { %v689_v41 = vadd.f32 %v1062_v40, %v923_v57  ;;  %v680_v42 = vpop.f32.mrb[35].mxu0  ;;  %1074 = vmatmul.mubr.msk.bf16.gmra.mrb[36].mxu1 %vm260_vm1, %v713_v34  ;;  %v706_v44 = vmax.f32 %v686_v37, 0.0 }
 0x393   :  { %v681_v43 = vadd.f32 %v923_v57, %v680_v42  ;;  %v704_v46 = vmax.f32 %v678_v39, 0.0 }
 0x394   :  { %v707_v45 = vmax.f32 %v689_v41, 0.0 }
 0x395   :  { %v705_v47 = vmax.f32 %v681_v43, 0.0 }
 0x396   :  { %v715_v48 = vpack.c.bf16 %v707_v45, %v706_v44 }
 0x397   :  { %v714_v49 = vpack.c.bf16 %v705_v47, %v704_v46 }
 0x399   :  { %1077 = vmatprep.mubr.msk.bf16.mxu1 %vm260_vm1, %v714_v49 }
 0x39a   :  { %1078 = vmatmul.mubr.msk.bf16.gmra.mrb[40].mxu1 %vm260_vm1, %v715_v48 }
 0x455   :  { %v1067_v51 = vpop.f32.mrb[28].mxu1 }
 0x456   :  { %v793_v52 = vadd.f32 %v1067_v51, %v933_v50  ;;  %v784_v53 = vpop.f32.mrb[29].mxu1 }
 0x457   :  { %v785_v54 = vadd.f32 %v933_v50, %v784_v53  ;;  %v1068_v55 = vpop.f32.mrb[30].mxu1 }
 0x458   :  { %v849_v56 = vmax.f32 %v793_v52, 0.0  ;;  %v796_v57 = vadd.f32 %v1068_v55, %v933_v50  ;;  %v787_v58 = vpop.f32.mrb[31].mxu1 }
 0x459   :  { %v847_v59 = vmax.f32 %v785_v54, 0.0  ;;  %v788_v60 = vadd.f32 %v933_v50, %v787_v58 }
 0x45a   :  { %866 = vst.msk [vmem:[%s1281_s3 + $0x10] sm:$0xff] %vm863_vm2, %v849_v56  ;;  %v850_v61 = vmax.f32 %v796_v57, 0.0 }
 0x45b   :  { %864 = vst.msk [vmem:[%s1281_s3] sm:$0xff] %vm863_vm2, %v847_v59  ;;  %v848_v62 = vmax.f32 %v788_v60, 0.0 }
 0x45c   :  { %867 = vst.msk [vmem:[%s1281_s3 + $0x18] sm:$0xff] %vm863_vm2, %v850_v61 }
 0x45d   :  { %865 = vst.msk [vmem:[%s1281_s3 + $0x8] sm:$0xff] %vm863_vm2, %v848_v62  ;;  %v1071_v63 = vpop.f32.mrb[32].mxu1 }
 0x45e   :  { %v809_v0 = vadd.f32 %v1071_v63, %v933_v50  ;;  %v800_v1 = vpop.f32.mrb[33].mxu1 }
 0x45f   :  { %v801_v2 = vadd.f32 %v933_v50, %v800_v1  ;;  %v1072_v3 = vpop.f32.mrb[34].mxu1 }
 0x460   :  { %v853_v4 = vmax.f32 %v809_v0, 0.0  ;;  %v812_v5 = vadd.f32 %v1072_v3, %v933_v50  ;;  %v803_v6 = vpop.f32.mrb[35].mxu1 }
 0x461   :  { %v851_v7 = vmax.f32 %v801_v2, 0.0  ;;  %v804_v8 = vadd.f32 %v933_v50, %v803_v6 }
 0x462   :  { %870 = vst.msk [vmem:[%s1281_s3 + $0x30] sm:$0xff] %vm863_vm2, %v853_v4  ;;  %v854_v9 = vmax.f32 %v812_v5, 0.0 }
 0x463   :  { %868 = vst.msk [vmem:[%s1281_s3 + $0x20] sm:$0xff] %vm863_vm2, %v851_v7  ;;  %v852_v10 = vmax.f32 %v804_v8, 0.0 }
 0x464   :  { %871 = vst.msk [vmem:[%s1281_s3 + $0x38] sm:$0xff] %vm863_vm2, %v854_v9 }
 0x465   :  { %869 = vst.msk [vmem:[%s1281_s3 + $0x28] sm:$0xff] %vm863_vm2, %v852_v10  ;;  %v1075_v11 = vpop.f32.mrb[36].mxu1 }
 0x466   :  { %v825_v12 = vadd.f32 %v1075_v11, %v933_v50  ;;  %v816_v13 = vpop.f32.mrb[37].mxu1 }
 0x467   :  { %v817_v14 = vadd.f32 %v933_v50, %v816_v13  ;;  %v1076_v15 = vpop.f32.mrb[38].mxu1 }
 0x468   :  { %v857_v16 = vmax.f32 %v825_v12, 0.0  ;;  %v828_v17 = vadd.f32 %v1076_v15, %v933_v50  ;;  %v819_v18 = vpop.f32.mrb[39].mxu1 }
 0x469   :  { %v855_v19 = vmax.f32 %v817_v14, 0.0  ;;  %v820_v20 = vadd.f32 %v933_v50, %v819_v18 }
 0x46a   :  { %874 = vst.msk [vmem:[%s1281_s3 + $0x50] sm:$0xff] %vm863_vm2, %v857_v16  ;;  %v858_v21 = vmax.f32 %v828_v17, 0.0 }
 0x46b   :  { %872 = vst.msk [vmem:[%s1281_s3 + $0x40] sm:$0xff] %vm863_vm2, %v855_v19  ;;  %v856_v22 = vmax.f32 %v820_v20, 0.0 }
 0x46c   :  { %875 = vst.msk [vmem:[%s1281_s3 + $0x58] sm:$0xff] %vm863_vm2, %v858_v21 }
 0x46d   :  { %873 = vst.msk [vmem:[%s1281_s3 + $0x48] sm:$0xff] %vm863_vm2, %v856_v22  ;;  %v1079_v23 = vpop.f32.mrb[40].mxu1 }
 0x46e   :  { %v841_v24 = vadd.f32 %v1079_v23, %v933_v50  ;;  %v832_v25 = vpop.f32.mrb[41].mxu1 }
 0x46f   :  { %v833_v26 = vadd.f32 %v933_v50, %v832_v25  ;;  %v1080_v27 = vpop.f32.mrb[42].mxu1 }
 0x470   :  { %v861_v28 = vmax.f32 %v841_v24, 0.0  ;;  %v844_v29 = vadd.f32 %v1080_v27, %v933_v50  ;;  %v835_v30 = vpop.f32.mrb[43].mxu1 }
 0x471   :  { %v859_v31 = vmax.f32 %v833_v26, 0.0  ;;  %v836_v32 = vadd.f32 %v933_v50, %v835_v30 }
 0x472   :  { %878 = vst.msk [vmem:[%s1281_s3 + $0x70] sm:$0xff] %vm863_vm2, %v861_v28  ;;  %v862_v33 = vmax.f32 %v844_v29, 0.0 }
 0x473   :  { %876 = vst.msk [vmem:[%s1281_s3 + $0x60] sm:$0xff] %vm863_vm2, %v859_v31  ;;  %v860_v34 = vmax.f32 %v836_v32, 0.0 }
 0x474   :  { %879 = vst.msk [vmem:[%s1281_s3 + $0x78] sm:$0xff] %vm863_vm2, %v862_v33 }
 0x475   :  { %877 = vst.msk [vmem:[%s1281_s3 + $0x68] sm:$0xff] %vm863_vm2, %v860_v34 }

</bundles_post_ra>
